<compile_context>
chip_gen: v5e
topology: v5e:2x2
jax: 0.10.0
libtpu: 0.0.40
codegen_flags: <defaults>
</compile_context>

<pallas_src>
import functools

import jax
import jax.numpy as jnp
from jax.experimental import pallas as pl
from jax.experimental.pallas import tpu as pltpu


def _round_up(x, m):
    return ((x + m - 1) // m) * m


def _tpu_vmem_bytes():
    """Physical VMEM per core; conservative 64 MiB fallback (v7x)."""
    try:
        return int(pltpu.get_tpu_info().vmem_capacity_bytes)
    except Exception:
        return 64 * 1024 * 1024


def _pick_hidden_tile(hidden, target):
    """Largest multiple of 128 <= target that divides hidden (so the hidden
    reduction has no ragged tile feeding garbage into the accumulator)."""
    t = (min(target, hidden) // 128) * 128
    while t >= 128:
        if hidden % t == 0:
            return t
        t -= 128
    return hidden


def _ffn_kernel(x_ref, w1_ref, w3_ref, w2_ref, o_ref, acc_ref):
    """Grid = (M tiles, hidden tiles).  Per (i, j):
         acc += silu(x_i @ w1_j) * (x_i @ w3_j) @ w2_j
       init at j==0, store at j==last."""
    j = pl.program_id(1)

    @pl.when(j == 0)
    def _init():
        acc_ref[...] = jnp.zeros_like(acc_ref)

    x = x_ref[...]
    if x.dtype != jnp.bfloat16:
        x = x.astype(jnp.bfloat16)                       # in-kernel cast (VPU)

    # Two MXU passes over this hidden tile, f32 accumulation.
    h1 = jnp.dot(x, w1_ref[...], preferred_element_type=jnp.float32)  # (tm, th)
    h3 = jnp.dot(x, w3_ref[...], preferred_element_type=jnp.float32)  # (tm, th)
    # SwiGLU gate in f32 (EUP sigmoid + VPU muls).
    gated = (h1 * jax.nn.sigmoid(h1)) * h3
    acc_ref[...] += jnp.dot(gated.astype(w2_ref.dtype), w2_ref[...],
                            preferred_element_type=jnp.float32)       # (tm, dim)

    @pl.when(j == pl.num_programs(1) - 1)
    def _finalize():
        o_ref[...] = acc_ref[...].astype(o_ref.dtype)


@functools.partial(jax.jit, static_argnames=("tm", "th"))
def feed_forward(x, w1_t, w3_t, w2_t, *, tm=None, th=None):
    """SwiGLU FFN: w2(silu(w1(x)) * w3(x)).

    x    : (..., dim), f32 or bf16; output has the same shape/dtype.
    w1_t : (dim, hidden) bf16   (== torch w1.weight.T)
    w3_t : (dim, hidden) bf16   (== torch w3.weight.T)
    w2_t : (hidden, dim) bf16   (== torch w2.weight.T)
    """
    orig_shape = x.shape
    dim = orig_shape[-1]
    hidden = w2_t.shape[0]
    assert w1_t.shape == (dim, hidden)
    assert w3_t.shape == (dim, hidden)
    assert w2_t.shape == (hidden, dim)
    assert hidden % 128 == 0, "hidden must be a multiple of the 128-lane width"

    x2d = x.reshape(-1, dim)
    M = x2d.shape[0]

    vmem_phys = _tpu_vmem_bytes()

    # Static tile sizes (sweepable). tm=256 fills the 256-wide MXU on v6e/v7x;
    # try tm=128 on v5e (4x 128x128 MXU, less f32 epilogue/spill pressure).
    if tm is None:
        tm = 256
    if th is None:
        th_target = 512 if vmem_phys < 96 * 1024 * 1024 else 1024  # v7x vs v5e/v6e
        th = _pick_hidden_tile(hidden, th_target)
    assert hidden % th == 0 and th % 128 == 0

    tm_eff = min(tm, _round_up(M, 16))
    grid = (pl.cdiv(M, tm_eff), hidden // th)   # reduction (hidden) axis last
    n_m_tiles = grid[0]

    x_bytes = jnp.dtype(x.dtype).itemsize
    out_bytes = x_bytes
    w_bytes = jnp.dtype(w1_t.dtype).itemsize

    # Advisory cost hint; weights are streamed once per M tile.
    flops = 6 * M * dim * hidden                     # x@w1 + x@w3 + gated@w2
    bytes_accessed = (M * dim * x_bytes
                      + n_m_tiles * (2 * dim * hidden + hidden * dim) * w_bytes
                      + M * dim * out_bytes)
    cost = pl.CostEstimate(flops=flops, transcendentals=M * hidden,
                           bytes_accessed=bytes_accessed)

    # Accurate VMEM footprint: double-buffered input/output tiles, f32 acc,
    # plus live f32 intermediates (h1/h3/gated); then 20% headroom, capped at
    # 85% of physical VMEM.  (On 128 MiB parts there is headroom for
    # pipeline_mode=pl.Buffered(3) on the weight specs if the DMA is exposed.)
    footprint = (2 * tm_eff * dim * x_bytes          # x tile, 2 bufs
                 + 2 * 2 * dim * th * w_bytes        # w1 + w3 tiles, 2 bufs each
                 + 2 * th * dim * w_bytes            # w2 tile, 2 bufs
                 + 2 * tm_eff * dim * out_bytes      # out tile, 2 bufs
                 + tm_eff * dim * 4                  # f32 accumulator scratch
                 + 3 * tm_eff * th * 4)              # h1/h3/gated f32 live
    vmem_limit = int(min(0.85 * vmem_phys,
                         max(32 * 1024 * 1024, 1.2 * footprint)))

    out = pl.pallas_call(
        _ffn_kernel,
        out_shape=jax.ShapeDtypeStruct((M, dim), x.dtype),
        grid_spec=pltpu.PrefetchScalarGridSpec(
            num_scalar_prefetch=0,
            grid=grid,
            in_specs=[
                pl.BlockSpec((tm_eff, dim), lambda i, j: (i, 0)),   # x (reused across j)
                pl.BlockSpec((dim, th), lambda i, j: (0, j)),       # w1^T hidden tile
                pl.BlockSpec((dim, th), lambda i, j: (0, j)),       # w3^T hidden tile
                pl.BlockSpec((th, dim), lambda i, j: (j, 0)),       # w2^T hidden tile
            ],
            out_specs=pl.BlockSpec((tm_eff, dim), lambda i, j: (i, 0)),
            scratch_shapes=[pltpu.VMEM((tm_eff, dim), jnp.float32)],
        ),
        compiler_params=pltpu.CompilerParams(
            dimension_semantics=("parallel", "arbitrary"),
            vmem_limit_bytes=vmem_limit),
        cost_estimate=cost,
    )(x2d, w1_t, w3_t, w2_t)

    return out.reshape(orig_shape)


def make_params(key, dim, hidden_dim_arg, multiple_of):
    """Deterministic synthetic weights; shapes match the PyTorch module."""
    hidden = int(2 * hidden_dim_arg / 3)
    hidden = multiple_of * ((hidden + multiple_of - 1) // multiple_of)
    k1, k2, k3 = jax.random.split(key, 3)
    scale = 0.02
    # Stored pre-transposed relative to torch nn.Linear weights, in bf16.
    w1_t = (scale * jax.random.normal(k1, (dim, hidden), jnp.float32)).astype(jnp.bfloat16)
    w3_t = (scale * jax.random.normal(k3, (dim, hidden), jnp.float32)).astype(jnp.bfloat16)
    w2_t = (scale * jax.random.normal(k2, (hidden, dim), jnp.float32)).astype(jnp.bfloat16)
    return w1_t, w3_t, w2_t, hidden


if __name__ == "__main__":
    # Small, TPU-friendly shapes: batch=2, seq=8, dim=128, hidden_dim arg=512,
    # multiple_of=128  ->  rounded hidden = 384.
    batch, seq, dim = 2, 8, 128
    hidden_dim_arg, multiple_of = 512, 128

    key = jax.random.PRNGKey(0)
    kx, kw = jax.random.split(key)
    x = jax.random.normal(kx, (batch, seq, dim), jnp.float32)
    w1_t, w3_t, w2_t, hidden = make_params(kw, dim, hidden_dim_arg, multiple_of)

    out = feed_forward(x, w1_t, w3_t, w2_t)
    out = jax.block_until_ready(out)

    # Pure-JAX reference with the same precision policy (bf16 matmul inputs,
    # f32 accumulation, f32 gate, bf16 re-cast before the w2 dot).
    xb = x.reshape(-1, dim).astype(jnp.bfloat16)
    h1 = jnp.dot(xb, w1_t, preferred_element_type=jnp.float32)
    h3 = jnp.dot(xb, w3_t, preferred_element_type=jnp.float32)
    gated = (h1 * jax.nn.sigmoid(h1)) * h3
    ref = jnp.dot(gated.astype(jnp.bfloat16), w2_t,
                  preferred_element_type=jnp.float32).astype(x.dtype).reshape(x.shape)

    assert out.shape == (batch, seq, dim)
    assert out.dtype == x.dtype
    assert jnp.allclose(out, ref, atol=2e-2, rtol=2e-2), "mismatch vs reference"

    print("KERNEL_OK")
</pallas_src>

<mosaic_0001>
module attributes {stable_mosaic.version = 11 : i64} {
  func.func @_ffn_kernel(%arg0: i32, %arg1: i32, %arg2: memref<16x128xf32, #tpu.memory_space<vmem>>, %arg3: memref<128x384xbf16, #tpu.memory_space<vmem>>, %arg4: memref<128x384xbf16, #tpu.memory_space<vmem>>, %arg5: memref<384x128xbf16, #tpu.memory_space<vmem>>, %arg6: memref<16x128xf32, #tpu.memory_space<vmem>>, %arg7: memref<16x128xf32, #tpu.memory_space<vmem>>) attributes {dimension_semantics = [#tpu.dimension_semantics<parallel>, #tpu.dimension_semantics<arbitrary>], iteration_bounds = array<i64: 1, 1>, scalar_prefetch = 0 : i64, scratch_operands = 1 : i64, tpu.core_type = #tpu.core_type<tc>, window_params = [{transform_indices = @transform_0, window_bounds = array<i64: 16, 128>}, {transform_indices = @transform_1, window_bounds = array<i64: 128, 384>}, {transform_indices = @transform_2, window_bounds = array<i64: 128, 384>}, {transform_indices = @transform_3, window_bounds = array<i64: 384, 128>}, {transform_indices = @transform_4, window_bounds = array<i64: 16, 128>}]} {
    %c0_i32 = arith.constant 0 : i32
    %0 = arith.cmpi eq, %arg1, %c0_i32 : i32
    %1 = arith.extui %0 : i1 to i32
    %c0_i32_0 = arith.constant 0 : i32
    %2 = arith.cmpi ne, %1, %c0_i32_0 : i32
    scf.if %2 {
      %cst_17 = arith.constant 0.000000e+00 : f32
      %25 = vector.broadcast %cst_17 : f32 to vector<16x128xf32>
      %c0_18 = arith.constant 0 : index
      %c0_19 = arith.constant 0 : index
      %26 = vector.load %arg7[%c0_18, %c0_19] : memref<16x128xf32, #tpu.memory_space<vmem>>, vector<16x128xf32>
      tpu.vector_store %arg7[%c0_18, %c0_19], %25 {strides = array<i32>} : memref<16x128xf32, #tpu.memory_space<vmem>>, vector<16x128xf32>,
    } else {
    }
    %c0 = arith.constant 0 : index
    %c0_1 = arith.constant 0 : index
    %3 = vector.load %arg2[%c0, %c0_1] : memref<16x128xf32, #tpu.memory_space<vmem>>, vector<16x128xf32>
    %4 = arith.truncf %3 : vector<16x128xf32> to vector<16x128xbf16>
    %c0_2 = arith.constant 0 : index
    %c0_3 = arith.constant 0 : index
    %5 = vector.load %arg3[%c0_2, %c0_3] : memref<128x384xbf16, #tpu.memory_space<vmem>>, vector<128x384xbf16>
    %cst = arith.constant dense<0.000000e+00> : vector<16x384xf32>
    %6 = tpu.matmul %4, %5, %cst {dimension_numbers = #tpu.dot_dimension_numbers<[1], [0], [0], [1], [0, 0, 1, 1], [], []>} : vector<16x128xbf16>, vector<128x384xbf16>, vector<16x384xf32> -> vector<16x384xf32>
    %c0_4 = arith.constant 0 : index
    %c0_5 = arith.constant 0 : index
    %7 = vector.load %arg4[%c0_4, %c0_5] : memref<128x384xbf16, #tpu.memory_space<vmem>>, vector<128x384xbf16>
    %cst_6 = arith.constant dense<0.000000e+00> : vector<16x384xf32>
    %8 = tpu.matmul %4, %7, %cst_6 {dimension_numbers = #tpu.dot_dimension_numbers<[1], [0], [0], [1], [0, 0, 1, 1], [], []>} : vector<16x128xbf16>, vector<128x384xbf16>, vector<16x384xf32> -> vector<16x384xf32>
    %9 = arith.negf %6 : vector<16x384xf32>
    %10 = math.exp %9 : vector<16x384xf32>
    %cst_7 = arith.constant 1.000000e+00 : f32
    %11 = vector.broadcast %cst_7 : f32 to vector<16x384xf32>
    %12 = arith.addf %11, %10 : vector<16x384xf32>
    %13 = arith.divf %11, %12 : vector<16x384xf32>
    %14 = arith.mulf %6, %13 : vector<16x384xf32>
    %15 = arith.mulf %14, %8 : vector<16x384xf32>
    %c0_8 = arith.constant 0 : index
    %c0_9 = arith.constant 0 : index
    %16 = vector.load %arg7[%c0_8, %c0_9] : memref<16x128xf32, #tpu.memory_space<vmem>>, vector<16x128xf32>
    %17 = arith.truncf %15 : vector<16x384xf32> to vector<16x384xbf16>
    %c0_10 = arith.constant 0 : index
    %c0_11 = arith.constant 0 : index
    %18 = vector.load %arg5[%c0_10, %c0_11] : memref<384x128xbf16, #tpu.memory_space<vmem>>, vector<384x128xbf16>
    %cst_12 = arith.constant dense<0.000000e+00> : vector<16x128xf32>
    %19 = tpu.matmul %17, %18, %cst_12 {dimension_numbers = #tpu.dot_dimension_numbers<[1], [0], [0], [1], [0, 0, 1, 1], [], []>} : vector<16x384xbf16>, vector<384x128xbf16>, vector<16x128xf32> -> vector<16x128xf32>
    %20 = arith.addf %16, %19 : vector<16x128xf32>
    %c0_13 = arith.constant 0 : index
    %c0_14 = arith.constant 0 : index
    %21 = vector.load %arg7[%c0_13, %c0_14] : memref<16x128xf32, #tpu.memory_space<vmem>>, vector<16x128xf32>
    tpu.vector_store %arg7[%c0_13, %c0_14], %20 {strides = array<i32>} : memref<16x128xf32, #tpu.memory_space<vmem>>, vector<16x128xf32>,
    %c0_i32_15 = arith.constant 0 : i32
    %22 = arith.cmpi eq, %arg1, %c0_i32_15 : i32
    %23 = arith.extui %22 : i1 to i32
    %c0_i32_16 = arith.constant 0 : i32
    %24 = arith.cmpi ne, %23, %c0_i32_16 : i32
    scf.if %24 {
      %c0_17 = arith.constant 0 : index
      %c0_18 = arith.constant 0 : index
      %25 = vector.load %arg7[%c0_17, %c0_18] : memref<16x128xf32, #tpu.memory_space<vmem>>, vector<16x128xf32>
      %c0_19 = arith.constant 0 : index
      %c0_20 = arith.constant 0 : index
      %26 = vector.load %arg6[%c0_19, %c0_20] : memref<16x128xf32, #tpu.memory_space<vmem>>, vector<16x128xf32>
      tpu.vector_store %arg6[%c0_19, %c0_20], %25 {strides = array<i32>} : memref<16x128xf32, #tpu.memory_space<vmem>>, vector<16x128xf32>,
    } else {
    }
    return
  }
  func.func @transform_0(%arg0: i32, %arg1: i32) -> (i32, i32) {
    %c0_i32 = arith.constant 0 : i32
    %c0_i32_0 = arith.constant 0 : i32
    return %arg0, %c0_i32 : i32, i32
  }
  func.func @transform_1(%arg0: i32, %arg1: i32) -> (i32, i32) {
    %c0_i32 = arith.constant 0 : i32
    %c0_i32_0 = arith.constant 0 : i32
    return %c0_i32, %arg1 : i32, i32
  }
  func.func @transform_2(%arg0: i32, %arg1: i32) -> (i32, i32) {
    %c0_i32 = arith.constant 0 : i32
    %c0_i32_0 = arith.constant 0 : i32
    return %c0_i32, %arg1 : i32, i32
  }
  func.func @transform_3(%arg0: i32, %arg1: i32) -> (i32, i32) {
    %c0_i32 = arith.constant 0 : i32
    %c0_i32_0 = arith.constant 0 : i32
    return %arg1, %c0_i32 : i32, i32
  }
  func.func @transform_4(%arg0: i32, %arg1: i32) -> (i32, i32) {
    %c0_i32 = arith.constant 0 : i32
    %c0_i32_0 = arith.constant 0 : i32
    return %arg0, %c0_i32 : i32, i32
  }
}

</mosaic_0001>

<bundles_post_ra>
// kernel: feed_forward.1
= control target key start
LH: loop header
LB: loop body
LE: loop exit
PB: predicated region body
PF: predicated region fallthrough
CT: control target
= control target key end

     0   :  { %9 = vsyncpa [#allocation4], 0  ;;  %s1604_s0 = inlined_call_operand.hbm [shape: f32[16,128], index: 0, kind: input, shape index: {}]   ;;  %s1605_s1 = inlined_call_operand.hbm [shape: bf16[128,384], index: 1, kind: input, shape index: {}]   ;;  %s1606_s2 = inlined_call_operand.hbm [shape: bf16[128,384], index: 2, kind: input, shape index: {}]   ;;  %s1607_s3 = inlined_call_operand.hbm [shape: bf16[384,128], index: 3, kind: input, shape index: {}]   ;;  %s1608_s4 = inlined_call_operand.hbm [shape: f32[16,128], index: 4, kind: output, shape index: {}]  }
   0x1   :  { %10 = vsyncpa [#allocation7], 0 }
   0x2   :  { %11 = vsyncpa [#allocation10], 0  ;;  %s30_s17 = sshll.u32 %s1605_s1, 4  ;;  %s31_s17 = int_to_ptr.hbm [resolvable:$true] %s30_s17 }
   0x3   :  { %12 = vsyncpa [#allocation5], 0  ;;  %s1420_s18 = smov [#allocation6]   ;;  %s17_s22 = sshll.u32 %s1604_s0, 4  ;;  %s18_s22 = int_to_ptr.hbm [resolvable:$true] %s17_s22 }
   0x4   :  { %s32_s19 = sshll.u32 %s1420_s18, 4  ;;  %s1421_s23 = smov 192   ;;  %s33_s19 = int_to_ptr.vmem [resolvable:$true] %s32_s19 }
   0x5   :  { %s1422_s24 = smov 12   ;;  %s1423_s25 = smov [#allocation3]  }
   0x6   :  { %38 = dma.hbm_to_vmem [thread:$0]  %s31_s17, 3072, %s33_s19, [#allocation7], %s1421_s23, %s1421_s23, %s1422_s24  }
   0x7   :  { %s19_s26 = sshll.u32 %s1423_s25, 4  ;;  %s1424_s27 = smov 128   ;;  %s20_s26 = int_to_ptr.vmem [resolvable:$true] %s19_s26 }
   0x8   :  { %s1425_s28 = smov 8   ;;  %s43_s30 = sshll.u32 %s1606_s2, 4  ;;  %s44_s30 = int_to_ptr.hbm [resolvable:$true] %s43_s30 }
   0x9   :  { %25 = dma.hbm_to_vmem [thread:$0]  %s18_s22, 256, %s20_s26, [#allocation4], %s1424_s27, %s1424_s27, %s1425_s28  }
   0xa   :  { %s1426_s5 = smov [#allocation8]   ;;  %s56_s8 = sshll.u32 %s1607_s3, 4  ;;  %s57_s8 = int_to_ptr.hbm [resolvable:$true] %s56_s8 }
   0xb   :  { %s45_s0 = sshll.u32 %s1426_s5, 4  ;;  %s1427_s9 = smov [#allocation9]   ;;  %s46_s0 = int_to_ptr.vmem [resolvable:$true] %s45_s0 }
   0xc   :  { %51 = dma.hbm_to_vmem [thread:$0]  %s44_s30, 3072, %s46_s0, [#allocation7], %s1421_s23, %s1421_s23, %s1422_s24  }
   0xd   :  { %s58_s10 = sshll.u32 %s1427_s9, 4  ;;  %s1428_s11 = smov 64   ;;  %s59_s10 = int_to_ptr.vmem [resolvable:$true] %s58_s10 }
   0xe   :  { %s1429_s12 = smov 4  }
   0xf   :  { %64 = dma.hbm_to_vmem [thread:$0]  %s57_s8, 3072, %s59_s10, [#allocation10], %s1428_s11, %s1428_s11, %s1429_s12  }
  0x10   :  { %1412 = dma.done.wait [#allocation4], 256  }
  0x11   :  { %1413 = vsyncadd [#allocation4], 4294967040 }
  0x12   :  { %1414 = dma.done.wait [#allocation7], 6144  }
  0x13   :  { %1415 = vsyncadd [#allocation7], 4294961152 }
  0x14   :  { %1416 = dma.done.wait [#allocation10], 3072  }
  0x15   :  { %1417 = vsyncadd [#allocation10], 4294964224  ;;  %v977_v0 = vld [vmem:[#allocation6 + $0xa8] sm:$0xf]  ;;  %v1207_v1 = vld [vmem:[#allocation6 + $0xb0] sm:$0xf0] }
  0x16   :  { %v1206_v2 = vld [vmem:[#allocation6 + $0xac] sm:$0xf]  ;;  %v978_v3 = vor.u32 %v1207_v1, %v977_v0  ;;  %v979_v4 = vld [vmem:[#allocation6 + $0xb4] sm:$0xf0]  ;;  %v985_v5 = vld [vmem:[#allocation6 + $0xb0] sm:$0xf] }
  0x17   :  { %v1208_v6 = vld [vmem:[#allocation6 + $0xb8] sm:$0xf0]  ;;  %v982_v7 = vor.u32 %v1206_v2, %v979_v4  ;;  %v965_v9 = vld [vmem:[#allocation6 + $0x90] sm:$0xf]  ;;  %v1203_v11 = vld [vmem:[#allocation6 + $0x94] sm:$0xf] }
  0x18   :  { %v986_v8 = vor.u32 %v1208_v6, %v985_v5  ;;  %v1204_v10 = vld [vmem:[#allocation6 + $0x98] sm:$0xf0]  ;;  %250 = vmatpush.bf16.msra.mxu0 %v978_v3  ;;  %v967_v13 = vld [vmem:[#allocation6 + $0x9c] sm:$0xf0]  ;;  %v973_v14 = vld [vmem:[#allocation6 + $0x98] sm:$0xf] }
  0x19   :  { %v966_v12 = vor.u32 %v1204_v10, %v965_v9  ;;  %v1205_v15 = vld [vmem:[#allocation6 + $0xa0] sm:$0xf0]  ;;  %264 = vmatpush.bf16.msra.mxu1 %v982_v7  ;;  %v970_v16 = vor.u32 %v1203_v11, %v967_v13  ;;  %v953_v18 = vld [vmem:[#allocation6 + $0x78] sm:$0xf]  ;;  %v1200_v20 = vld [vmem:[#allocation6 + $0x7c] sm:$0xf] }
  0x1a   :  { %278 = vmatpush.bf16.msra.mxu2 %v986_v8  ;;  %v974_v17 = vor.u32 %v1205_v15, %v973_v14  ;;  %v1201_v19 = vld [vmem:[#allocation6 + $0x80] sm:$0xf0]  ;;  %v955_v21 = vld [vmem:[#allocation6 + $0x84] sm:$0xf0]  ;;  %v961_v22 = vld [vmem:[#allocation6 + $0x80] sm:$0xf] }
  0x1b   :  { %v1202_v23 = vld [vmem:[#allocation6 + $0x88] sm:$0xf0]  ;;  %v954_v24 = vor.u32 %v1201_v19, %v953_v18  ;;  %v958_v25 = vor.u32 %v1200_v20, %v955_v21  ;;  %v941_v27 = vld [vmem:[#allocation6 + $0x60] sm:$0xf]  ;;  %v1197_v29 = vld [vmem:[#allocation6 + $0x64] sm:$0xf] }
  0x1c   :  { %251 = vmatpush.bf16.msra.mxu0 %v966_v12  ;;  %v962_v26 = vor.u32 %v1202_v23, %v961_v22  ;;  %v1198_v28 = vld [vmem:[#allocation6 + $0x68] sm:$0xf0]  ;;  %v943_v30 = vld [vmem:[#allocation6 + $0x6c] sm:$0xf0]  ;;  %v949_v31 = vld [vmem:[#allocation6 + $0x68] sm:$0xf] }
  0x1d   :  { %265 = vmatpush.bf16.msra.mxu1 %v970_v16  ;;  %v1199_v32 = vld [vmem:[#allocation6 + $0x70] sm:$0xf0]  ;;  %v1073_v33 = vld [vmem:[#allocation8 + $0xa8] sm:$0xf]  ;;  %v942_v35 = vor.u32 %v1198_v28, %v941_v27  ;;  %v946_v39 = vor.u32 %v1197_v29, %v943_v30  ;;  %v1194_v41 = vld [vmem:[#allocation6 + $0x4c] sm:$0xf] }
  0x1e   :  { %279 = vmatpush.bf16.msra.mxu2 %v974_v17  ;;  %v1231_v34 = vld [vmem:[#allocation8 + $0xb0] sm:$0xf0]  ;;  %v929_v36 = vld [vmem:[#allocation6 + $0x48] sm:$0xf]  ;;  %v950_v40 = vor.u32 %v1199_v32, %v949_v31  ;;  %v931_v42 = vld [vmem:[#allocation6 + $0x54] sm:$0xf0] }
  0x1f   :  { %v1195_v37 = vld [vmem:[#allocation6 + $0x50] sm:$0xf0]  ;;  %v1074_v38 = vor.u32 %v1231_v34, %v1073_v33  ;;  %v1061_v43 = vld [vmem:[#allocation8 + $0x90] sm:$0xf]  ;;  %v1196_v45 = vld [vmem:[#allocation6 + $0x58] sm:$0xf0]  ;;  %v934_v51 = vor.u32 %v1194_v41, %v931_v42 }
  0x20   :  { %252 = vmatpush.bf16.msra.mxu0 %v954_v24  ;;  %v937_v44 = vld [vmem:[#allocation6 + $0x50] sm:$0xf]  ;;  %v1228_v46 = vld [vmem:[#allocation8 + $0x98] sm:$0xf0]  ;;  %v930_v48 = vor.u32 %v1195_v37, %v929_v36  ;;  %v1049_v49 = vld [vmem:[#allocation8 + $0x78] sm:$0xf] }
  0x21   :  { %266 = vmatpush.bf16.msra.mxu1 %v958_v25  ;;  %452 = vmatpush.bf16.msra.mxu3 %v1074_v38  ;;  %v1062_v47 = vor.u32 %v1228_v46, %v1061_v43  ;;  %v1225_v50 = vld [vmem:[#allocation8 + $0x80] sm:$0xf0]  ;;  %v938_v52 = vor.u32 %v1196_v45, %v937_v44  ;;  %v917_v53 = vld [vmem:[#allocation6 + $0x30] sm:$0xf]  ;;  %v1192_v54 = vld [vmem:[#allocation6 + $0x38] sm:$0xf0] }
  0x22   :  { %280 = vmatpush.bf16.msra.mxu2 %v962_v26  ;;  %v1191_v55 = vld [vmem:[#allocation6 + $0x34] sm:$0xf]  ;;  %v919_v56 = vld [vmem:[#allocation6 + $0x3c] sm:$0xf0]  ;;  %v925_v57 = vld [vmem:[#allocation6 + $0x38] sm:$0xf]  ;;  %v1050_v59 = vor.u32 %v1225_v50, %v1049_v49  ;;  %v918_v62 = vor.u32 %v1192_v54, %v917_v53 }
  0x23   :  { %v1193_v58 = vld [vmem:[#allocation6 + $0x40] sm:$0xf0]  ;;  %v1037_v60 = vld [vmem:[#allocation8 + $0x60] sm:$0xf]  ;;  %v1222_v61 = vld [vmem:[#allocation8 + $0x68] sm:$0xf0]  ;;  %v922_v63 = vor.u32 %v1191_v55, %v919_v56 }
  0x24   :  { %253 = vmatpush.bf16.msra.mxu0 %v942_v35  ;;  %v926_v0 = vor.u32 %v1193_v58, %v925_v57  ;;  %v905_v1 = vld [vmem:[#allocation6 + $0x18] sm:$0xf]  ;;  %v1189_v2 = vld [vmem:[#allocation6 + $0x20] sm:$0xf0]  ;;  %v1188_v3 = vld [vmem:[#allocation6 + $0x1c] sm:$0xf]  ;;  %v1038_v7 = vor.u32 %v1222_v61, %v1037_v60 }
  0x25   :  { %267 = vmatpush.bf16.msra.mxu1 %v946_v39  ;;  %453 = vmatpush.bf16.msra.mxu3 %v1062_v47  ;;  %v907_v4 = vld [vmem:[#allocation6 + $0x24] sm:$0xf0]  ;;  %v913_v5 = vld [vmem:[#allocation6 + $0x20] sm:$0xf]  ;;  %v1190_v6 = vld [vmem:[#allocation6 + $0x28] sm:$0xf0]  ;;  %v906_v10 = vor.u32 %v1189_v2, %v905_v1 }
  0x26   :  { %281 = vmatpush.bf16.msra.mxu2 %v950_v40  ;;  %v1025_v8 = vld [vmem:[#allocation8 + $0x48] sm:$0xf]  ;;  %v1219_v9 = vld [vmem:[#allocation8 + $0x50] sm:$0xf0]  ;;  %v893_v11 = vld [vmem:[#allocation6] sm:$0xf]  ;;  %v910_v13 = vor.u32 %v1188_v3, %v907_v4  ;;  %v914_v14 = vor.u32 %v1190_v6, %v913_v5 }
  0x27   :  { %v1186_v12 = vld [vmem:[#allocation6 + $0x8] sm:$0xf0]  ;;  %v1185_v15 = vld [vmem:[#allocation6 + $0x4] sm:$0xf]  ;;  %v895_v16 = vld [vmem:[#allocation6 + $0xc] sm:$0xf0]  ;;  %v1026_v21 = vor.u32 %v1219_v9, %v1025_v8 }
  0x28   :  { %254 = vmatpush.bf16.msra.mxu0 %v930_v48  ;;  %v901_v17 = vld [vmem:[#allocation6 + $0x8] sm:$0xf]  ;;  %v1187_v18 = vld [vmem:[#allocation6 + $0x10] sm:$0xf0]  ;;  %v1230_v19 = vld [vmem:[#allocation8 + $0xac] sm:$0xf]  ;;  %v894_v25 = vor.u32 %v1186_v12, %v893_v11  ;;  %v898_v29 = vor.u32 %v1185_v15, %v895_v16 }
  0x29   :  { %268 = vmatpush.bf16.msra.mxu1 %v934_v51  ;;  %454 = vmatpush.bf16.msra.mxu3 %v1050_v59  ;;  %v1075_v20 = vld [vmem:[#allocation8 + $0xb4] sm:$0xf0]  ;;  %v1081_v22 = vld [vmem:[#allocation8 + $0xb0] sm:$0xf]  ;;  %v1232_v23 = vld [vmem:[#allocation8 + $0xb8] sm:$0xf0]  ;;  %v902_v30 = vor.u32 %v1187_v18, %v901_v17 }
  0x2a   :  { %282 = vmatpush.bf16.msra.mxu2 %v938_v52  ;;  %v87_v24 = vld [vmem:[#allocation3] sm:$0xff]  ;;  %v88_v26 = vld [vmem:[#allocation3 + $0x8] sm:$0xff]  ;;  %v1078_v31 = vor.u32 %v1230_v19, %v1075_v20  ;;  %v1082_v32 = vor.u32 %v1232_v23, %v1081_v22  ;;  %v1063_v35 = vld [vmem:[#allocation8 + $0x9c] sm:$0xf0]  ;;  %s1430_s2 = smov [#allocation11]   ;;  %s876_s15 = sshll.u32 %s1608_s4, 4  ;;  %s877_s15 = int_to_ptr.hbm [resolvable:$true] %s876_s15 }
  0x2b   :  { %v1013_v27 = vld [vmem:[#allocation8 + $0x30] sm:$0xf]  ;;  %v1216_v28 = vld [vmem:[#allocation8 + $0x38] sm:$0xf0]  ;;  %v1227_v33 = vld [vmem:[#allocation8 + $0x94] sm:$0xf]  ;;  %v1471_v34 = vpack.c.bf16 %v88_v26, %v87_v24 }
  0x2c   :  { %255 = vmatpush.bf16.msra.mxu0 %v918_v62  ;;  %v1069_v36 = vld [vmem:[#allocation8 + $0x98] sm:$0xf]  ;;  %v1229_v37 = vld [vmem:[#allocation8 + $0xa0] sm:$0xf0]  ;;  %v1014_v38 = vor.u32 %v1216_v28, %v1013_v27  ;;  %v1066_v41 = vor.u32 %v1227_v33, %v1063_v35  ;;  %v1224_v43 = vld [vmem:[#allocation8 + $0x7c] sm:$0xf] }
  0x2d   :  { %269 = vmatpush.bf16.msra.mxu1 %v922_v63  ;;  %455 = vmatpush.bf16.msra.mxu3 %v1038_v7  ;;  %v1001_v39 = vld [vmem:[#allocation8 + $0x18] sm:$0xf]  ;;  %v1213_v40 = vld [vmem:[#allocation8 + $0x20] sm:$0xf0]  ;;  %v1070_v42 = vor.u32 %v1229_v37, %v1069_v36  ;;  %v1051_v44 = vld [vmem:[#allocation8 + $0x84] sm:$0xf0] }
  0x2e   :  { %283 = vmatpush.bf16.msra.mxu2 %v926_v0  ;;  %v1057_v45 = vld [vmem:[#allocation8 + $0x80] sm:$0xf]  ;;  %v1226_v46 = vld [vmem:[#allocation8 + $0x88] sm:$0xf0]  ;;  %v1002_v47 = vor.u32 %v1213_v40, %v1001_v39  ;;  %v1054_v50 = vor.u32 %v1224_v43, %v1051_v44  ;;  %v1221_v52 = vld [vmem:[#allocation8 + $0x64] sm:$0xf] }
  0x2f   :  { %v989_v48 = vld [vmem:[#allocation8] sm:$0xf]  ;;  %v1210_v49 = vld [vmem:[#allocation8 + $0x8] sm:$0xf0]  ;;  %v1058_v51 = vor.u32 %v1226_v46, %v1057_v45  ;;  %v1039_v53 = vld [vmem:[#allocation8 + $0x6c] sm:$0xf0] }
  0x30   :  { %256 = vmatpush.bf16.msra.mxu0 %v906_v10  ;;  %v1045_v54 = vld [vmem:[#allocation8 + $0x68] sm:$0xf]  ;;  %v1223_v55 = vld [vmem:[#allocation8 + $0x70] sm:$0xf0]  ;;  %v990_v56 = vor.u32 %v1210_v49, %v989_v48  ;;  %v1042_v57 = vor.u32 %v1221_v52, %v1039_v53  ;;  %v1218_v59 = vld [vmem:[#allocation8 + $0x4c] sm:$0xf] }
  0x31   :  { %270 = vmatpush.bf16.msra.mxu1 %v910_v13  ;;  %456 = vmatpush.bf16.msra.mxu3 %v1026_v21  ;;  %v1046_v58 = vor.u32 %v1223_v55, %v1045_v54  ;;  %v1027_v60 = vld [vmem:[#allocation8 + $0x54] sm:$0xf0]  ;;  %v1033_v61 = vld [vmem:[#allocation8 + $0x50] sm:$0xf]  ;;  %v1220_v62 = vld [vmem:[#allocation8 + $0x58] sm:$0xf0] }
  0x32   :  { %284 = vmatpush.bf16.msra.mxu2 %v914_v14  ;;  %v1030_v63 = vor.u32 %v1218_v59, %v1027_v60  ;;  %v1034_v0 = vor.u32 %v1220_v62, %v1033_v61  ;;  %v1215_v1 = vld [vmem:[#allocation8 + $0x34] sm:$0xf]  ;;  %v1015_v2 = vld [vmem:[#allocation8 + $0x3c] sm:$0xf0]  ;;  %v1021_v3 = vld [vmem:[#allocation8 + $0x38] sm:$0xf] }
  0x33   :  { %v1217_v4 = vld [vmem:[#allocation8 + $0x40] sm:$0xf0]  ;;  %v1018_v5 = vor.u32 %v1215_v1, %v1015_v2  ;;  %v1212_v7 = vld [vmem:[#allocation8 + $0x1c] sm:$0xf]  ;;  %v1003_v8 = vld [vmem:[#allocation8 + $0x24] sm:$0xf0] }
  0x34   :  { %257 = vmatpush.bf16.msra.mxu0 %v894_v25  ;;  %v1022_v6 = vor.u32 %v1217_v4, %v1021_v3  ;;  %v1009_v9 = vld [vmem:[#allocation8 + $0x20] sm:$0xf]  ;;  %v1214_v10 = vld [vmem:[#allocation8 + $0x28] sm:$0xf0]  ;;  %v1006_v11 = vor.u32 %v1212_v7, %v1003_v8  ;;  %v1209_v13 = vld [vmem:[#allocation8 + $0x4] sm:$0xf] }
  0x35   :  { %271 = vmatpush.bf16.msra.mxu1 %v898_v29  ;;  %457 = vmatpush.bf16.msra.mxu3 %v1014_v38  ;;  %v1010_v12 = vor.u32 %v1214_v10, %v1009_v9  ;;  %v991_v14 = vld [vmem:[#allocation8 + $0xc] sm:$0xf0]  ;;  %v997_v15 = vld [vmem:[#allocation8 + $0x8] sm:$0xf]  ;;  %v1211_v16 = vld [vmem:[#allocation8 + $0x10] sm:$0xf0] }
  0x36   :  { %285 = vmatpush.bf16.msra.mxu2 %v902_v30  ;;  %v994_v17 = vor.u32 %v1209_v13, %v991_v14  ;;  %v998_v18 = vor.u32 %v1211_v16, %v997_v15  ;;  %v1240_v19 = vld [vmem:[#allocation9 + $0x38] sm:$0xff]  ;;  %v1239_v21 = vld [vmem:[#allocation9 + $0x30] sm:$0xff]  ;;  %v1238_v24 = vld [vmem:[#allocation9 + $0x28] sm:$0xff]  ;;  %s874_s3 = sshll.u32 %s1430_s2, 4  ;;  %s875_s3 = int_to_ptr.vmem [resolvable:$true] %s874_s3 }
  0x37   :  { %258 = vmatmul.bf16.vlgmr.msra.gmra.mxu0 %v1471_v34  ;;  %v1248_v20 = vld [vmem:[#allocation9 + $0x78] sm:$0xff]  ;;  %v1247_v22 = vld [vmem:[#allocation9 + $0x70] sm:$0xff]  ;;  %v1246_v25 = vld [vmem:[#allocation9 + $0x68] sm:$0xff] }
  0x38   :  { %466 = vmatpush.bf16.msrb.mxu0 %v1078_v31  ;;  %272 = vmatmul.bf16.vlgmr.msra.gmra.mxu1 %v1471_v34  ;;  %v1256_v23 = vld [vmem:[#allocation9 + $0xb8] sm:$0xff]  ;;  %v1255_v26 = vld [vmem:[#allocation9 + $0xb0] sm:$0xff]  ;;  %v1237_v27 = vld [vmem:[#allocation9 + $0x20] sm:$0xff] }
  0x39   :  { %480 = vmatpush.bf16.msrb.mxu1 %v1082_v32  ;;  %286 = vmatmul.bf16.vlgmr.msra.gmra.mxu2 %v1471_v34  ;;  %v1245_v28 = vld [vmem:[#allocation9 + $0x60] sm:$0xff]  ;;  %v1254_v29 = vld [vmem:[#allocation9 + $0xa8] sm:$0xff]  ;;  %v1236_v33 = vld [vmem:[#allocation9 + $0x18] sm:$0xff] }
  0x3a   :  { %458 = vmatpush.bf16.msra.mxu3 %v1002_v47  ;;  %817 = vmatpush.bf16.msrb.mxu2 %v1240_v19  ;;  %v1253_v36 = vld [vmem:[#allocation9 + $0xa0] sm:$0xff]  ;;  %v1235_v37 = vld [vmem:[#allocation9 + $0x10] sm:$0xff]  ;;  %v1252_v40 = vld [vmem:[#allocation9 + $0x98] sm:$0xff] }
  0x3b   :  { %v1243_v38 = vld [vmem:[#allocation9 + $0x50] sm:$0xff]  ;;  %v1234_v46 = vld [vmem:[#allocation9 + $0x8] sm:$0xff]  ;;  %v1233_v53 = vld [vmem:[#allocation9] sm:$0xff] }
  0x3c   :  { %467 = vmatpush.bf16.msrb.mxu0 %v1066_v41  ;;  %v1242_v47 = vld [vmem:[#allocation9 + $0x48] sm:$0xff]  ;;  %v1251_v52 = vld [vmem:[#allocation9 + $0x90] sm:$0xff]  ;;  %v1241_v54 = vld [vmem:[#allocation9 + $0x40] sm:$0xff] }
  0x3d   :  { %481 = vmatpush.bf16.msrb.mxu1 %v1070_v42  ;;  %v1249_v1 = vld [vmem:[#allocation9 + $0x80] sm:$0xff] }
  0x3e   :  { %459 = vmatpush.bf16.msra.mxu3 %v990_v56  ;;  %818 = vmatpush.bf16.msrb.mxu2 %v1239_v21  ;;  %v1250_v56 = vld [vmem:[#allocation9 + $0x88] sm:$0xff] }
  0x40   :  { %468 = vmatpush.bf16.msrb.mxu0 %v1054_v50 }
  0x41   :  { %482 = vmatpush.bf16.msrb.mxu1 %v1058_v51  ;;  %460 = vmatmul.bf16.vlgmr.msra.gmra.mxu3 %v1471_v34 }
  0x42   :  { %831 = vmatpush.bf16.msrb.mxu3 %v1248_v20  ;;  %819 = vmatpush.bf16.msrb.mxu2 %v1238_v24 }
  0x44   :  { %469 = vmatpush.bf16.msrb.mxu0 %v1042_v57 }
  0x45   :  { %483 = vmatpush.bf16.msrb.mxu1 %v1046_v58 }
  0x46   :  { %832 = vmatpush.bf16.msrb.mxu3 %v1247_v22  ;;  %820 = vmatpush.bf16.msrb.mxu2 %v1237_v27 }
  0x48   :  { %470 = vmatpush.bf16.msrb.mxu0 %v1030_v63 }
  0x49   :  { %484 = vmatpush.bf16.msrb.mxu1 %v1034_v0 }
  0x4a   :  { %833 = vmatpush.bf16.msrb.mxu3 %v1246_v25  ;;  %821 = vmatpush.bf16.msrb.mxu2 %v1236_v33 }
  0x4c   :  { %471 = vmatpush.bf16.msrb.mxu0 %v1018_v5 }
  0x4d   :  { %485 = vmatpush.bf16.msrb.mxu1 %v1022_v6 }
  0x4e   :  { %834 = vmatpush.bf16.msrb.mxu3 %v1245_v28  ;;  %822 = vmatpush.bf16.msrb.mxu2 %v1235_v37 }
  0x50   :  { %472 = vmatpush.bf16.msrb.mxu0 %v1006_v11 }
  0x51   :  { %486 = vmatpush.bf16.msrb.mxu1 %v1010_v12 }
  0x52   :  { %823 = vmatpush.bf16.msrb.mxu2 %v1234_v46 }
  0x54   :  { %473 = vmatpush.bf16.msrb.mxu0 %v994_v17 }
  0x55   :  { %487 = vmatpush.bf16.msrb.mxu1 %v998_v18 }
  0x56   :  { %824 = vmatpush.bf16.msrb.mxu2 %v1233_v53 }
  0x57   :  { %474 = vmatmul.bf16.vlgmr.msrb.gmra.mxu0 %v1471_v34 }
  0x58   :  { %488 = vmatmul.bf16.vlgmr.msrb.gmra.mxu1 %v1471_v34  ;;  %845 = vmatpush.bf16.msra.mxu0 %v1256_v23  ;;  %v1244_v34 = vld [vmem:[#allocation9 + $0x58] sm:$0xff] }
  0x59   :  { %835 = vmatpush.bf16.msrb.mxu3 %v1244_v34 }
  0x5c   :  { %846 = vmatpush.bf16.msra.mxu0 %v1255_v26 }
  0x5d   :  { %836 = vmatpush.bf16.msrb.mxu3 %v1243_v38 }
  0x60   :  { %847 = vmatpush.bf16.msra.mxu0 %v1254_v29 }
  0x61   :  { %837 = vmatpush.bf16.msrb.mxu3 %v1242_v47 }
  0x64   :  { %848 = vmatpush.bf16.msra.mxu0 %v1253_v36 }
  0x65   :  { %838 = vmatpush.bf16.msrb.mxu3 %v1241_v54 }
  0x68   :  { %849 = vmatpush.bf16.msra.mxu0 %v1252_v40 }
  0x6c   :  { %850 = vmatpush.bf16.msra.mxu0 %v1251_v52 }
  0x70   :  { %851 = vmatpush.bf16.msra.mxu0 %v1250_v56 }
  0x74   :  { %852 = vmatpush.bf16.msra.mxu0 %v1249_v1 }
  0xb4   :  { %v1479_v30 = vpop.f32.mrf.mxu0 }
  0xb5   :  { %v1083_v31 = vmul.f32 -1.442695, %v1479_v30  ;;  %v1482_v32 = vpop.f32.mrf.mxu1 }
  0xb6   :  { %v1084_v35 = vmul.f32 -1.442695, %v1482_v32 }
  0xb7   :  { %1268 = vpow2.f32 %v1083_v31 }
  0xb8   :  { %1270 = vpow2.f32 %v1084_v35 }
  0xbc   :  { %v1485_v39 = vpop.f32.mrf.mxu2  ;;  %v1488_v42 = vpop.f32.mrf.mxu0 }
  0xbd   :  { %v1085_v41 = vmul.f32 -1.442695, %v1485_v39  ;;  %v1269_v43 = vpop.eup %1268  ;;  %v1086_v44 = vmul.f32 -1.442695, %v1488_v42  ;;  %v1491_v45 = vpop.f32.mrf.mxu1 }
  0xbe   :  { %v1271_v48 = vpop.eup %1270  ;;  %v512_v49 = vadd.f32 1.0, %v1269_v43  ;;  %v1087_v50 = vmul.f32 -1.442695, %v1491_v45 }
  0xbf   :  { %1272 = vpow2.f32 %v1085_v41  ;;  %v1494_v51 = vadd.f32 1.0, %v1271_v48 }
  0xc0   :  { %1274 = vpow2.f32 %v1086_v44  ;;  %v527_v9 = vand.u32 2147483647, %v512_v49  ;;  %v529_v10 = vand.u32 2147483648, %v512_v49  ;;  %vm523_vm1 = vweird.f32 %v512_v49 }
  0xc1   :  { %1276 = vrcp.f32 %v512_v49  ;;  %v542_v14 = vand.u32 2147483647, %v1494_v51  ;;  %vm538_vm2 = vweird.f32 %v1494_v51  ;;  %v544_v17 = vand.u32 2147483648, %v1494_v51 }
  0xc2   :  { %1278 = vrcp.f32 %v1494_v51  ;;  %vm1527_vm4 = vcmp.eq.f32.partialorder %v527_v9, 8.507059e+37  ;;  %v530_v21 = vor.u32 1.1754944e-38, %v529_v10 }
  0xc3   :  { %1280 = vpow2.f32 %v1087_v50  ;;  %vm1537_vm6 = vcmp.eq.f32.partialorder %v542_v14, 8.507059e+37  ;;  %v545_v34 = vor.u32 1.1754944e-38, %v544_v17 }
  0xc4   :  { %v1497_v55 = vpop.f32.mrf.mxu2  ;;  %v461_v27 = vpop.f32.mrf.mxu3 }
  0xc5   :  { %v1273_v57 = vpop.eup %1272  ;;  %v1088_v58 = vmul.f32 -1.442695, %v1497_v55 }
  0xc6   :  { %v1275_v59 = vpop.eup %1274  ;;  %v1500_v60 = vadd.f32 1.0, %v1273_v57 }
  0xc7   :  { %v1277_v61 = vpop.eup %1276  ;;  %v1502_v62 = vadd.f32 1.0, %v1275_v59  ;;  %1282 = vpow2.f32 %v1088_v58 }
  0xc8   :  { %v1504_v63 = vpop.eup %1278  ;;  %v519_v0 = vmul.f32 %v1277_v61, %v512_v49  ;;  %1284 = vrcp.f32 %v1500_v60  ;;  %vm524_vm0 = vweird.f32 %v1277_v61  ;;  %vm553_vm7 = vweird.f32 %v1500_v60 }
  0xc9   :  { %v1281_v2 = vpop.eup %1280  ;;  %v534_v3 = vmul.f32 %v1504_v63, %v1494_v51  ;;  %1286 = vrcp.f32 %v1502_v62  ;;  %vm1523_vm3 = vmor %vm523_vm1, %vm524_vm0  ;;  %vm539_vm5 = vweird.f32 %v1504_v63  ;;  %v572_v26 = vand.u32 2147483647, %v1502_v62 }
  0xca   :  { %v520_v4 = vsub.f32 1.0, %v519_v0  ;;  %v1510_v7 = vadd.f32 1.0, %v1281_v2  ;;  %v574_v31 = vand.u32 2147483648, %v1502_v62  ;;  %v557_v36 = vand.u32 2147483647, %v1500_v60  ;;  %vm1550_vm8 = vmor %vm538_vm2, %vm539_vm5 }
  0xcb   :  { %v535_v5 = vsub.f32 1.0, %v534_v3  ;;  %v559_v46 = vand.u32 2147483648, %v1500_v60  ;;  %vm568_vm10 = vweird.f32 %v1502_v62  ;;  %vm1560_vm11 = vcmp.eq.f32.partialorder %v572_v26, 8.507059e+37 }
  0xcc   :  { %v521_v6 = vmul.f32 %v1277_v61, %v520_v4  ;;  %1288 = vrcp.f32 %v1510_v7  ;;  %v575_v49 = vor.u32 1.1754944e-38, %v574_v31  ;;  %v587_v51 = vand.u32 2147483647, %v1510_v7 }
  0xcd   :  { %v1283_v8 = vpop.eup %1282  ;;  %v536_v13 = vmul.f32 %v1504_v63, %v535_v5  ;;  %v589_v54 = vand.u32 2147483648, %v1510_v7  ;;  %vm1571_vm15 = vcmp.eq.f32.partialorder %v557_v36, 8.507059e+37  ;;  %vm583_vm1 = vweird.f32 %v1510_v7 }
  0xce   :  { %v1512_v11 = vpop.eup %1284  ;;  %v522_v12 = vadd.f32 %v1277_v61, %v521_v6  ;;  %v1521_v18 = vadd.f32 1.0, %v1283_v8  ;;  %vm588_vm2 = vcmp.eq.f32.partialorder %v587_v51, 8.507059e+37  ;;  %v463_v8 = vpop.f32.mrf.mxu3 }
  0xcf   :  { %v549_v15 = vmul.f32 %v1512_v11, %v1500_v60  ;;  %v1287_v16 = vpop.eup %1286  ;;  %v537_v25 = vadd.f32 %v1504_v63, %v536_v13  ;;  %vm554_vm12 = vweird.f32 %v1512_v11  ;;  %v590_v6 = vor.u32 1.1754944e-38, %v589_v54 }
  0xd0   :  { %v564_v23 = vmul.f32 %v1287_v16, %v1502_v62  ;;  %v526_v24 = vsel %vm1523_vm3, %v1277_v61, %v522_v12  ;;  %1290 = vrcp.f32 %v1521_v18  ;;  %vm569_vm9 = vweird.f32 %v1287_v16  ;;  %vm1580_vm0 = vmor %vm553_vm7, %vm554_vm12 }
  0xd1   :  { %v550_v22 = vsub.f32 1.0, %v549_v15  ;;  %v531_v38 = vsel %vm1527_vm4, %v530_v21, %v526_v24  ;;  %v541_v44 = vsel %vm1550_vm8, %v1504_v63, %v537_v25  ;;  %vm570_vm13 = vmor %vm568_vm10, %vm569_vm9  ;;  %v560_v62 = vor.u32 1.1754944e-38, %v559_v46 }
  0xd2   :  { %v565_v29 = vsub.f32 1.0, %v564_v23  ;;  %v1289_v33 = vpop.eup %1288  ;;  %v608_v52 = vmul.f32 %v531_v38, %v1479_v30  ;;  %v546_v57 = vsel %vm1537_vm6, %v545_v34, %v541_v44  ;;  %v604_v10 = vand.u32 2147483648, %v1521_v18 }
  0xd3   :  { %v551_v35 = vmul.f32 %v1512_v11, %v550_v22  ;;  %v579_v43 = vmul.f32 %v1289_v33, %v1510_v7  ;;  %vm584_vm14 = vweird.f32 %v1289_v33  ;;  %v609_v4 = vmul.f32 %v546_v57, %v1482_v32 }
  0xd4   :  { %v475_v37 = vpop.f32.mrf.mxu0  ;;  %v566_v41 = vmul.f32 %v1287_v16, %v565_v29  ;;  %vm585_vm3 = vmor %vm583_vm1, %vm584_vm14  ;;  %v614_v12 = vmul.f32 %v608_v52, %v461_v27  ;;  %v602_v7 = vand.u32 2147483647, %v1521_v18  ;;  %vm598_vm5 = vweird.f32 %v1521_v18 }
  0xd5   :  { %v580_v50 = vsub.f32 1.0, %v579_v43  ;;  %v552_v53 = vadd.f32 %v1512_v11, %v551_v35  ;;  %v489_v3 = vpop.f32.mrf.mxu1  ;;  %v605_v19 = vor.u32 1.1754944e-38, %v604_v10  ;;  %v615_v20 = vmul.f32 %v609_v4, %v475_v37 }
  0xd6   :  { %v567_v48 = vadd.f32 %v1287_v16, %v566_v41  ;;  %v1291_v56 = vpop.eup %1290  ;;  %vm603_vm7 = vcmp.eq.f32.partialorder %v602_v7, 8.507059e+37 }
  0xd7   :  { %v581_v59 = vmul.f32 %v1289_v33, %v580_v50  ;;  %v594_v63 = vmul.f32 %v1291_v56, %v1521_v18  ;;  %v556_v5 = vsel %vm1580_vm0, %v1512_v11, %v552_v53  ;;  %vm599_vm4 = vweird.f32 %v1291_v56 }
  0xd8   :  { %v571_v58 = vsel %vm570_vm13, %v1287_v16, %v567_v48  ;;  %v561_v32 = vsel %vm1571_vm15, %v560_v62, %v556_v5  ;;  %vm600_vm6 = vmor %vm598_vm5, %vm599_vm4 }
  0xd9   :  { %v576_v30 = vsel %vm1560_vm11, %v575_v49, %v571_v58  ;;  %v582_v2 = vadd.f32 %v1289_v33, %v581_v59  ;;  %v595_v60 = vsub.f32 1.0, %v594_v63  ;;  %v610_v22 = vmul.f32 %v561_v32, %v1485_v39 }
  0xda   :  { %v611_v1 = vmul.f32 %v576_v30, %v1488_v42 }
  0xdb   :  { %v586_v9 = vsel %vm585_vm3, %v1289_v33, %v582_v2  ;;  %v596_v14 = vmul.f32 %v1291_v56, %v595_v60 }
  0xdc   :  { %v617_v42 = vmul.f32 %v611_v1, %v463_v8  ;;  %v591_v13 = vsel %vm588_vm2, %v590_v6, %v586_v9  ;;  %v477_v15 = vpop.f32.mrf.mxu0 }
  0xdd   :  { %v612_v11 = vmul.f32 %v591_v13, %v1491_v45  ;;  %v597_v17 = vadd.f32 %v1291_v56, %v596_v14  ;;  %v491_v27 = vpop.f32.mrf.mxu1  ;;  %v616_v45 = vmul.f32 %v610_v22, %v489_v3 }
  0xde   :  { %v622_v16 = vpack.c.bf16 %v617_v42, %v614_v12 }
  0xdf   :  { %v618_v21 = vmul.f32 %v612_v11, %v477_v15  ;;  %v601_v23 = vsel %vm600_vm6, %v1291_v56, %v597_v17 }
  0xe0   :  { %825 = vmatmul.bf16.vlgmr.msrb.gmra.mxu2 %v622_v16  ;;  %v606_v24 = vsel %vm603_vm7, %v605_v19, %v601_v23 }
  0xe1   :  { %v623_v25 = vpack.c.bf16 %v618_v21, %v615_v20  ;;  %v613_v26 = vmul.f32 %v606_v24, %v1497_v55 }
  0xe3   :  { %839 = vmatmul.bf16.vlgmr.msrb.gmra.mxu3 %v623_v25  ;;  %v619_v28 = vmul.f32 %v613_v26, %v491_v27 }
  0xe5   :  { %v624_v29 = vpack.c.bf16 %v619_v28, %v616_v45 }
  0xe7   :  { %853 = vmatmul.bf16.vlgmr.msra.gmra.mxu0 %v624_v29 }
 0x163   :  { %v826_v18 = vpop.f32.mrf.mxu2 }
 0x164   :  { %v854_v33 = vpop.f32.mrf.mxu0 }
 0x166   :  { %v840_v31 = vpop.f32.mrf.mxu3 }
 0x167   :  { %v841_v34 = vadd.f32 %v840_v31, %v826_v18 }
 0x169   :  { %v855_v35 = vadd.f32 %v854_v33, %v841_v34 }
 0x16b   :  { %868 = vst [vmem:[#allocation11] sm:$0xff] %v855_v35  ;;  %v828_v36 = vpop.f32.mrf.mxu2 }
 0x16c   :  { %v856_v37 = vpop.f32.mrf.mxu0 }
 0x16e   :  { %v842_v39 = vpop.f32.mrf.mxu3 }
 0x16f   :  { %v843_v55 = vadd.f32 %v842_v39, %v828_v36 }
 0x171   :  { %v857_v38 = vadd.f32 %v856_v37, %v843_v55 }
 0x173   :  { %869 = vst [vmem:[#allocation11 + $0x8] sm:$0xff] %v857_v38 }
 0x174   :  { %882 = dma.vmem_to_hbm [thread:$0]  %s875_s3, 256, %s877_s15, [#allocation5], %s1424_s27, %s1424_s27, %s1425_s28  }
 0x175   :  { %1418 = dma.done.wait [#allocation5], 256  }
 0x176   :  { %1419 = vsyncadd [#allocation5], 4294967040 }
 0x177   :  { %887 = vsyncpa [#allocation4], 1 }
 0x178   :  { %888 = vsyncpa [#allocation7], 1 }
 0x179   :  { %889 = vsyncpa [#allocation10], 1 }
 0x17a   :  { %890 = vsyncpa [#allocation5], 1 }

</bundles_post_ra>
